<compile_context>
chip_gen: v6e
topology: v6e:2x2x1
jax: 0.10.0
libtpu: 0.0.40
codegen_flags: <defaults>
</compile_context>

<pallas_src>
import jax
import jax.numpy as jnp
from jax.experimental import pallas as pl
from jax.experimental.pallas import tpu as pltpu


def _round_up(x, m):
    return (x + m - 1) // m * m


def conv3x3_bn_relu_kernel(x_ref, w_ref, bias_ref, o_ref):
    # x_ref:    (K, TM)   bf16 im2col columns (K = 9*Cin, spatial M on lanes)
    # w_ref:    (CP, K)   bf16 conv weights with the BN scale folded in
    # bias_ref: (CP, 1)   f32 folded BatchNorm bias
    # o_ref:    (CP, TM)  bf16 output tile (lane-dense store, Cout on sublanes)
    acc = jnp.dot(w_ref[...], x_ref[...], preferred_element_type=jnp.float32)
    y = jnp.maximum(acc + bias_ref[...], 0.0)          # f32 epilogue (v5e-safe)
    o_ref[...] = y.astype(o_ref.dtype)


def inconv_forward(x_nchw, w_hwio, scale, bias, *, tm=256,
                   out_dtype=jnp.bfloat16):
    """inconv.forward: conv3x3 (stride 1, pad 1, no bias) + BN(eval) + ReLU.

    Input NCHW (PyTorch convention); weights HWIO (3, 3, Cin, Cout).
    Returns NCHW in `out_dtype` (bf16 by default to halve the store bytes;
    accumulation is f32 regardless).
    """
    N, Cin, H, W = x_nchw.shape
    Cout = w_hwio.shape[-1]
    K = 9 * Cin
    M = H * W

    # --- wrapper-side im2col built directly in the transposed (K, M) layout ---
    # TODO(synk): for realistic first-layer resolutions move im2col in-kernel
    #             (DMA a halo'd row tile and build the 9 taps in VMEM) to avoid
    #             this HBM round trip; at toy shapes it is negligible.
    xp = jnp.pad(x_nchw, ((0, 0), (0, 0), (1, 1), (1, 1)))        # spatial halo
    patches = [xp[:, :, dy:dy + H, dx:dx + W]
               for dy in range(3) for dx in range(3)]             # 9x (N,Cin,H,W)
    # k index = (dy*3 + dx)*Cin + ci  -> matches w_hwio.reshape(K, Cout) below
    x_t = jnp.concatenate(patches, axis=1).reshape(N, K, M)

    CP = _round_up(Cout, 8)                        # Cout pads to sublanes only
    TM = _round_up(min(tm, _round_up(M, 128)), 128)
    MP = _round_up(M, TM)

    x_t = jnp.pad(x_t, ((0, 0), (0, 0), (0, MP - M))).astype(jnp.bfloat16)

    # Fold the BN scale into the conv weights in f32, then cast for the MXU.
    w_flat = w_hwio.reshape(K, Cout) * scale[None, :].astype(jnp.float32)
    w_t = jnp.pad(w_flat.T, ((0, CP - Cout), (0, 0))).astype(jnp.bfloat16)

    bias_p = jnp.pad(bias, (0, CP - Cout)).reshape(CP, 1).astype(jnp.float32)

    grid = (N, MP // TM)
    out = pl.pallas_call(
        conv3x3_bn_relu_kernel,
        out_shape=jax.ShapeDtypeStruct((N, CP, MP), out_dtype),
        grid_spec=pltpu.PrefetchScalarGridSpec(
            num_scalar_prefetch=0,
            grid=grid,
            in_specs=[
                # leading batch dim squeezed -> kernel sees a 2-D (K, TM) tile
                pl.BlockSpec((None, K, TM), lambda n, m: (n, 0, m)),
                # constant block index -> weights / bias stay resident in VMEM
                pl.BlockSpec((CP, K), lambda n, m: (0, 0)),
                pl.BlockSpec((CP, 1), lambda n, m: (0, 0)),
            ],
            out_specs=pl.BlockSpec((None, CP, TM), lambda n, m: (n, 0, m)),
        ),
        compiler_params=pltpu.CompilerParams(
            # Both grid axes independent (no cross-step reduction): shard
            # across TensorCores on megacore parts (N splits across v7x TCs).
            dimension_semantics=("parallel", "parallel")),
        # TODO(synk): set vmem_limit_bytes explicitly when scaling TM / H*W up
        #             (v7x has 64 MiB physical VMEM vs 128 MiB on v5e/v6e).
    )(x_t, w_t, bias_p)

    # Output is already channel-major: just drop the padding -> NCHW.
    return out[:, :Cout, :M].reshape(N, Cout, H, W)


def init_params(key, cin, cout, eps=1e-5):
    """Deterministic synthetic params for conv3x3 + BatchNorm2d (eval mode)."""
    kw, kg, kb, km, kv = jax.random.split(key, 5)
    fan_in = cin * 9
    w = jax.random.normal(kw, (3, 3, cin, cout), jnp.float32) / jnp.sqrt(fan_in)
    gamma = 1.0 + 0.1 * jax.random.normal(kg, (cout,), jnp.float32)
    beta = 0.1 * jax.random.normal(kb, (cout,), jnp.float32)
    mean = 0.1 * jax.random.normal(km, (cout,), jnp.float32)
    var = jnp.abs(1.0 + 0.1 * jax.random.normal(kv, (cout,), jnp.float32))
    scale = gamma / jnp.sqrt(var + eps)
    bias = beta - mean * scale
    return w, scale, bias


def inconv_ref(x_nchw, w_hwio, scale, bias):
    """Pure-JAX f32 reference (module semantics) for correctness checking."""
    x = jnp.transpose(x_nchw, (0, 2, 3, 1))
    c = jax.lax.conv_general_dilated(
        x, w_hwio, window_strides=(1, 1), padding="SAME",
        dimension_numbers=("NHWC", "HWIO", "NHWC"))
    y = jnp.maximum(c * scale + bias, 0.0)
    return jnp.transpose(y, (0, 3, 1, 2))


if __name__ == "__main__":
    key = jax.random.PRNGKey(0)
    N, in_channels, out_channels, H, W = 2, 4, 8, 16, 16
    kx, kp = jax.random.split(key, 2)

    x = jax.random.normal(kx, (N, in_channels, H, W), jnp.float32)
    w, scale, bias = init_params(kp, in_channels, out_channels)

    y = jax.block_until_ready(inconv_forward(x, w, scale, bias))
    y_ref = inconv_ref(x, w, scale, bias)

    assert y.shape == (N, out_channels, H, W)
    assert y.dtype == jnp.bfloat16
    # bf16 MXU inputs + bf16 output vs f32 reference -> loosened tolerance
    # (accumulation stays f32 inside the kernel).
    assert jnp.allclose(y.astype(jnp.float32), y_ref, atol=2e-2, rtol=2e-2)
    print("KERNEL_OK")
</pallas_src>

<mosaic_0001>
module attributes {stable_mosaic.version = 11 : i64} {
  func.func @conv3x3_bn_relu_kernel(%arg0: i32, %arg1: i32, %arg2: memref<1x36x256xbf16, #tpu.memory_space<vmem>>, %arg3: memref<8x36xbf16, #tpu.memory_space<vmem>>, %arg4: memref<8x1xf32, #tpu.memory_space<vmem>>, %arg5: memref<1x8x256xbf16, #tpu.memory_space<vmem>>) attributes {dimension_semantics = [#tpu.dimension_semantics<parallel>, #tpu.dimension_semantics<parallel>], iteration_bounds = array<i64: 2, 1>, scalar_prefetch = 0 : i64, scratch_operands = 0 : i64, tpu.core_type = #tpu.core_type<tc>, window_params = [{transform_indices = @transform_0, window_bounds = array<i64: 1, 36, 256>}, {pipeline_mode = #tpu.pipeline_mode<synchronous>, transform_indices = @transform_1, window_bounds = array<i64: 8, 36>}, {pipeline_mode = #tpu.pipeline_mode<synchronous>, transform_indices = @transform_2, window_bounds = array<i64: 8, 1>}, {transform_indices = @transform_3, window_bounds = array<i64: 1, 8, 256>}]} {
    %c0 = arith.constant 0 : index
    %c0_0 = arith.constant 0 : index
    %0 = vector.load %arg3[%c0, %c0_0] : memref<8x36xbf16, #tpu.memory_space<vmem>>, vector<8x36xbf16>
    %c0_1 = arith.constant 0 : index
    %c0_2 = arith.constant 0 : index
    %c0_3 = arith.constant 0 : index
    %1 = vector.load %arg2[%c0_1, %c0_2, %c0_3] : memref<1x36x256xbf16, #tpu.memory_space<vmem>>, vector<1x36x256xbf16>
    %2 = vector.shape_cast %1 : vector<1x36x256xbf16> to vector<36x256xbf16>
    %cst = arith.constant dense<0.000000e+00> : vector<8x256xf32>
    %3 = tpu.matmul %0, %2, %cst {dimension_numbers = #tpu.dot_dimension_numbers<[1], [0], [0], [1], [0, 0, 1, 1], [], []>} : vector<8x36xbf16>, vector<36x256xbf16>, vector<8x256xf32> -> vector<8x256xf32>
    %c0_4 = arith.constant 0 : index
    %c0_5 = arith.constant 0 : index
    %4 = vector.load %arg4[%c0_4, %c0_5] : memref<8x1xf32, #tpu.memory_space<vmem>>, vector<8x1xf32>
    %5 = vector.broadcast %4 : vector<8x1xf32> to vector<8x256xf32>
    %6 = arith.addf %3, %5 : vector<8x256xf32>
    %cst_6 = arith.constant 0.000000e+00 : f32
    %7 = vector.broadcast %cst_6 : f32 to vector<8x256xf32>
    %8 = arith.maximumf %6, %7 : vector<8x256xf32>
    %9 = arith.truncf %8 : vector<8x256xf32> to vector<8x256xbf16>
    %c0_7 = arith.constant 0 : index
    %c0_8 = arith.constant 0 : index
    %c0_9 = arith.constant 0 : index
    %10 = vector.load %arg5[%c0_7, %c0_8, %c0_9] : memref<1x8x256xbf16, #tpu.memory_space<vmem>>, vector<1x8x256xbf16>
    %11 = vector.shape_cast %10 : vector<1x8x256xbf16> to vector<8x256xbf16>
    %12 = vector.shape_cast %9 : vector<8x256xbf16> to vector<1x8x256xbf16>
    tpu.vector_store %arg5[%c0_7, %c0_8, %c0_9], %12 {strides = array<i32>} : memref<1x8x256xbf16, #tpu.memory_space<vmem>>, vector<1x8x256xbf16>,
    return
  }
  func.func @transform_0(%arg0: i32, %arg1: i32) -> (i32, i32, i32) {
    %c0_i32 = arith.constant 0 : i32
    %c0_i32_0 = arith.constant 0 : i32
    return %arg0, %c0_i32, %arg1 : i32, i32, i32
  }
  func.func @transform_1(%arg0: i32, %arg1: i32) -> (i32, i32) {
    %c0_i32 = arith.constant 0 : i32
    %c0_i32_0 = arith.constant 0 : i32
    %c0_i32_1 = arith.constant 0 : i32
    return %c0_i32, %c0_i32_0 : i32, i32
  }
  func.func @transform_2(%arg0: i32, %arg1: i32) -> (i32, i32) {
    %c0_i32 = arith.constant 0 : i32
    %c0_i32_0 = arith.constant 0 : i32
    %c0_i32_1 = arith.constant 0 : i32
    return %c0_i32, %c0_i32_0 : i32, i32
  }
  func.func @transform_3(%arg0: i32, %arg1: i32) -> (i32, i32, i32) {
    %c0_i32 = arith.constant 0 : i32
    %c0_i32_0 = arith.constant 0 : i32
    return %arg0, %c0_i32, %arg1 : i32, i32, i32
  }
}

</mosaic_0001>

<bundles_post_ra>
// kernel: tpu_custom_call.1
= control target key start
LH: loop header
LB: loop body
LE: loop exit
PB: predicated region body
PF: predicated region fallthrough
CT: control target
= control target key end

     0   :  { %8 = vsyncpa [#allocation3], 0  ;;  %s688_s0 = inlined_call_operand.vmem [shape: bf16[2,36,256], index: 0, kind: input, shape index: {}]   ;;  %s689_s1 = inlined_call_operand.vmem [shape: bf16[8,36], index: 1, kind: input, shape index: {}]   ;;  %s690_s2 = inlined_call_operand.vmem [shape: f32[8,1], index: 2, kind: input, shape index: {}]   ;;  %s691_s3 = inlined_call_operand.hbm [shape: bf16[2,8,256], index: 3, kind: output, shape index: {}]  }
   0x1   :  { %10 = vsyncpa [#allocation3 + $0x1], 0  ;;  %s583_s12 = smov 0   ;;  %s585_s13 = smov 0  }
   0x2   :  { %s587_s14 = smov 0   ;;  %s589_s15 = smov 0  }
   0x3   :  { %s591_s16 = smov 0   ;;  %s593_s17 = smov 0  }
   0x4 LB: > { %s394_s18 = sadd.s32 4294967295, %s559_s17   ;;  %s395_s19 = sadd.s32 4294967294, %s559_s17   ;;  %s559_s17 = sphi %s593_s17, %s16_s17   ;;  %s555_s16 = sphi %s591_s16, %s698_s16   ;;  %s551_s15 = sphi %s589_s15, %s697_s15   ;;  %s547_s14 = sphi %s587_s14, %s696_s14   ;;  %s543_s13 = sphi %s585_s13, %s695_s13   ;;  %s539_s12 = sphi %s583_s12, %s694_s12  }
   0x5   : > { %s28_s20 = sadd.s32 1, %s555_s16  ;;  %s107_s21 = sadd.s32 1, %s547_s14 }
   0x6   : > { %p30_p0 = scmp.ge.s32.totalorder %s28_s20, 2  ;;  %p117_p1 = scmp.ne.s32.totalorder %s547_s14, %s543_s13 }
   0x7   : > { %p118_p2 = scmp.eq.s32.totalorder %s394_s18, 1  ;;  %p123_p3 = scmp.ne.s32.totalorder %s543_s13, %s539_s12 }
   0x8   : > { %s700_s20 = smov (%p30_p0, %s28_s20), 0  ;;  %p124_p5 = scmp.eq.s32.totalorder %s395_s19, 1 }
   0x9   : > { %p623_p4 = por %p118_p2, %p117_p1  ;;  %s102_s23 = ssub.s32 %s555_s16, %s700_s20 }
   0xa   : > { %p398_p6 = scmp.ge.s32.totalorder %s559_s17, 1  ;;  %p105_p7 = scmp.eq.s32.totalorder %s102_s23, 0 }
   0xb   : > { %p630_p8 = por %p124_p5, %p123_p3  ;;  %p161_p9 = scmp.lt.s32.totalorder %s559_s17, 3 }
   0xc   : > { %s636_s25 = scalar_select %p105_p7, %s547_s14, %s107_s21  }
   0xd   : > { %p162_p10 = pnand %p398_p6, %p161_p9 }
   0xe   : > { %p190_p11 = scmp.lt.s32.totalorder (!%p162_p10), %s551_s15, 1  ;;  %s186_s8 = sand.u32 (!%p162_p10), 1, %s543_s13  }
   0xf   : > { %165 = sbr.rel (%p162_p10) target bundleno = 254 (0xfe), region = 32  ;;  %s399_s9 = sshll.u32 (!%p162_p10), %s186_s8, 3 }
  0x10   : > { %s416_s10 = sshll.u32 (!%p162_p10), %s551_s15, 7  ;;  %s188_s11 = scalar_lea.vmem (!%p162_p10), [#allocation2], %s399_s9 }
  0x11   : > { %s318_s18 = sshll.u32 (!%p162_p10), %s188_s11, 4  ;;  %s316_s23 = scalar_lea.hbm (!%p162_p10), %s691_s3, %s416_s10  ;;  %s319_s18 = int_to_ptr.vmem [resolvable:$true] %s318_s18 }
  0x12   : > { %s302_s26 = scalar_lea.sflag (!%p162_p10), [#allocation3], %s186_s8  ;;  %s483_s27 = scalar_lea.vmem (!%p162_p10), %s319_s18, 128 }
  0x13   : > { %p484_p12 = scmp.ne.s32.totalorder (!%p162_p10), %s319_s18, %s483_s27 }
  0x14   : > { %v561_v0 = vmov 0   ;;  %v207_v1 = vld [vmem:[%s690_s2] sm:$0xff]  ;;  %s191_s28 = scalar_select %p190_p11, %s551_s15, 1  ;;  %vm242_vm0 = vcmask 1041408   ;;  %vm238_vm1 = vcmask 293888  }
  0x15   : > { %281 = vmatprep.mubr.bf16.mxu0 %v561_v0  ;;  %474 = vset.pattern.permute.xlu0 %v561_v0  ;;  %v201_v10 = vld [vmem:[%s689_s1] sm:$0xf]  ;;  %p485_p13 = pnand %p484_p12, %p623_p4 }
  0x16   : > { %210 = vperm.xlu0 %474, %v207_v1   ;;  %s417_s29 = smul.u32 40, %s191_s28  ;;  %s562_s28 = smov [#allocation2]  }
  0x17   : > { %p486_p0 = pneg %p485_p13  ;;  %s487_s15 = sshll.u32 %s562_s28, 4  ;;  %s488_s15 = int_to_ptr.vmem [resolvable:$false] %s487_s15 }
  0x18   : > { %s197_s5 = scalar_lea.vmem %s688_s0, %s417_s29  ;;  %s489_s29 = scalar_lea.vmem %s488_s15, 256 }
  0x19   : > { %v206_v2 = vld [vmem:[%s197_s5 + $0x20] sm:$0x33]  ;;  %v477_v5 = vld [vmem:[%s197_s5 + $0x14] ss:$8 sps:$4 sm:$0xff]   ;;  %v479_v7 = vld [vmem:[%s197_s5 + $0x10] ss:$8 sps:$4 sm:$0xff]   ;;  %p490_p1 = scmp.lt.s32.totalorder %s319_s18, %s488_s15  ;;  %p491_p2 = scmp.lt.s32.totalorder %s489_s29, %s483_s27 }
  0x1a   : > { %v406_v3 = vcombine.high %v206_v2, %v206_v2  ;;  %v405_v4 = vcombine.low %v206_v2, %v206_v2  ;;  %v480_v8 = vld [vmem:[%s197_s5 + $0x4] ss:$8 sps:$4 sm:$0xff]   ;;  %v482_v9 = vld [vmem:[%s197_s5] ss:$8 sps:$4 sm:$0xff]  }
  0x1b   : > { %p492_p3 = por %p491_p2, %p490_p1 }
  0x1c   : > { %407 = vmatprep.subr.msk.bf16.mxu0 %vm242_vm0, %v406_v3  ;;  %v244_v6 = vsel %vm242_vm0, %v405_v4, 0 }
  0x1d   : > { %260 = vmatpush1.bf16.msra.mxu0 %v244_v6  ;;  %p493_p5 = pnand %p492_p3, %p486_p0 }
  0x1e   : > { %261 = vmatprep.subr.bf16.mxu0 %v477_v5 }
  0x21   : > { %262 = vmatpush1.bf16.msra.mxu0 %v479_v7 }
  0x22   : > { %263 = vmatprep.subr.bf16.mxu0 %v480_v8 }
  0x25   : > { %264 = vmatpush1.bf16.msra.mxu0 %v482_v9 }
  0x28   : > { %408 = vmatmul.mubr.msk.bf16.vlgmr.msra.gmra.mxu0 %vm238_vm1, %v201_v10 }
  0x91   : > { %v211_v11 = vpop.permute.xlu0 %210 }
  0xe8   : > { %v283_v12 = vpop.f32.mrf.mxu0 }
  0xe9   : > { %v284_v13 = vadd.f32 %v283_v12, %v211_v11 }
  0xea   : > { %v285_v14 = vpop.f32.mrf.mxu0 }
  0xeb   : > { %v286_v15 = vadd.f32 %v285_v14, %v211_v11  ;;  %v290_v17 = vmax.f32 %v284_v13, 0.0 }
  0xec   : > { %v287_v16 = vpop.f32.mrf.mxu0 }
  0xed   : > { %v291_v18 = vmax.f32 %v286_v15, 0.0 }
  0xee   : > { %v288_v19 = vpop.f32.mrf.mxu0 }
  0xef   : > { %v415_v20 = vpack.c.bf16 %v291_v18, %v290_v17 }
  0xf1   : > { %300 = vst [vmem:[%s188_s11] sm:$0xff] %v415_v20 }
  0xf2   : > { %496 = shalt.err (!%p493_p5)
}
  0xf3   : > { %s497_s30 = scalar_lea.hbm %s316_s23, 128  ;;  %s501_s6 = scalar_lea.hbm %s691_s3, 256 }
  0xf4   : > { %p498_p6 = scmp.ne.s32.totalorder %s316_s23, %s497_s30  ;;  %p502_p10 = scmp.lt.s32.totalorder %s316_s23, %s691_s3 }
  0xf5   : > { %p503_p11 = scmp.lt.s32.totalorder %s501_s6, %s497_s30 }
  0xf6   : > { %p499_p7 = pnand %p498_p6, %p623_p4 }
  0xf7   : > { %p504_p12 = por %p503_p11, %p502_p10 }
  0xf8   : > { %p500_p9 = pneg %p499_p7 }
  0xfa   : > { %p505_p13 = pnand %p504_p12, %p500_p9 }
  0xfc   : > { %508 = shalt.err (!%p505_p13)
}
  0xfd   : > { %418 = dma.vmem_to_hbm [thread:$0]  (%p623_p4), %s319_s18, 128, %s316_s23, %s302_s26  }
  0xfe PF: > { %p424_p0 = scmp.ge.s32.totalorder %s559_s17, 2  ;;  %s330_s9 = sand.u32 1, %s539_s12  }
  0xff   : > { %s331_s10 = scalar_lea.sflag [#allocation3], %s330_s9 }
 0x100   : > { %p421_p1 = pnand %p424_p0, %p630_p8 }
 0x102   : > { %p422_p2 = pneg %p421_p1 }
 0x104   : > { %534 = dma.done.wait (%p422_p2), %s331_s10, 128  }
 0x105   : > { %536 = vsyncadd (%p422_p2), %s331_s10, 4294967168  ;;  %s16_s17 = sadd.s32 1, %s559_s17   ;;  %s694_s12 = smov %s543_s13 }
 0x106   : > { %p13_p3 = scmp.ge.s32.totalorder %s16_s17, 4   ;;  %s695_s13 = smov %s547_s14 }
 0x107   : > { %s696_s14 = smov %s636_s25  ;;  %s697_s15 = smov %s555_s16 }
 0x108   : > { %s698_s16 = smov %s700_s20  ;;  %15 = sbr.rel (!%p13_p3) target bundleno = 4 (0x4), region = 67 }
 0x10d   :  { %336 = vsyncpa [#allocation3], 1 }
 0x10e   :  { %338 = vsyncpa [#allocation3 + $0x1], 1 }

</bundles_post_ra>
